<compile_context>
chip_gen: v7x
topology: tpu7x:2x2x1
jax: 0.10.0
libtpu: 0.0.40
codegen_flags: <defaults>
</compile_context>

<pallas_src>
import jax
import jax.numpy as jnp
from jax.experimental import pallas as pl
from jax.experimental.pallas import tpu as pltpu

NUM_MODELS = 3
NUM_CLASSES = 10
SET_WEIGHTS = (0.45, 0.15, 0.45)


def _ensemble_kernel(x_ref, w_ref, sb_ref, out_ref):
    # x_ref:   VMEM (B, D)       f32  -- flattened NCHW input (stays f32: v5e VPU)
    # w_ref:   VMEM (M*NC, D)    f32 or bf16 -- lane-major fused weight slab,
    #                                           row m*NC + c holds sub_w[m, :, c]
    # sb_ref:  VMEM (M*NC, 2)    f32  -- col 0: weights[m]*set_weights[m]
    #                                   col 1: B * scale[m] * b[m, c] (bias folded w/ batch sum)
    # out_ref: VMEM (M*NC, 1)    f32
    #
    # Batch sum hoisted through the linear layer: sum_b(x_b @ W) == (sum_b x_b) @ W.
    x_sum = jnp.sum(x_ref[...], axis=0, keepdims=True)            # (1, D), f32 sublane reduce
    w = w_ref[...].astype(jnp.float32)                            # cheap upcast if bf16 weights
    # VPU broadcast-multiply + XLU lane reduce (MXU skipped: 30x1024 is ~0.1% MXU util).
    red = jnp.sum(w * x_sum, axis=-1, keepdims=True)              # (M*NC, 1)
    out_ref[...] = red * sb_ref[:, 0:1] + sb_ref[:, 1:2]          # f32 fused scale + bias


def ensemble_forward(x_nchw, sub_w, sub_b, weights, set_weights,
                     weight_dtype=jnp.float32):
    """Pallas implementation of Ensemble.forward (eval path).

    weight_dtype: dtype of the fused weight slab on its HBM->VMEM DMA.
    jnp.bfloat16 halves the dominant weight DMA bytes (recommended on
    v6e/v7x); the batch sum, reduce and epilogue always stay f32.
    Returns an (M, NC) array: per-model logits summed over the batch and
    scaled by weights[m] * set_weights[m]  (== stack(dim=1).sum(dim=0)).
    """
    B = x_nchw.shape[0]
    M, D, NC = sub_w.shape

    x_flat = x_nchw.reshape(B, D).astype(jnp.float32)

    # Lane-major fused slab: row j = m*NC + c is sub_w[m, :, c]; contiguous
    # D-element HBM rows -> near-peak DMA bandwidth for the dominant transfer.
    w_fused = jnp.transpose(sub_w, (0, 2, 1)).reshape(M * NC, D).astype(weight_dtype)

    scale = (weights * set_weights).astype(jnp.float32)                     # (M,)
    scale_col = jnp.repeat(scale, NC).reshape(M * NC, 1)                    # (M*NC, 1)
    # sum_b (x_b @ W[m] + b[m]) * s[m]  ==  s[m]*(x_sum @ W[m]) + B*s[m]*b[m]
    bias_col = (B * scale[:, None] * sub_b.astype(jnp.float32)).reshape(M * NC, 1)
    sb = jnp.concatenate([scale_col, bias_col], axis=1)                     # one (M*NC, 2) operand

    out_col = pl.pallas_call(
        _ensemble_kernel,
        out_shape=jax.ShapeDtypeStruct((M * NC, 1), jnp.float32),
        in_specs=[
            pl.BlockSpec(memory_space=pltpu.MemorySpace.VMEM),   # x_flat
            pl.BlockSpec(memory_space=pltpu.MemorySpace.VMEM),   # fused weight slab
            pl.BlockSpec(memory_space=pltpu.MemorySpace.VMEM),   # merged scale/bias
        ],
        out_specs=pl.BlockSpec(memory_space=pltpu.MemorySpace.VMEM),
    )(x_flat, w_fused, sb)

    # Layout plumbing only: split the fused (M*NC, 1) column back into (M, NC).
    return out_col.reshape(M, NC)


if __name__ == "__main__":
    key = jax.random.PRNGKey(0)
    kx, kw, kb = jax.random.split(key, 3)

    B, C, H, W = 2, 4, 16, 16
    D = C * H * W

    # Deterministic synthetic inputs / parameters.
    x = jax.random.normal(kx, (B, C, H, W), dtype=jnp.float32)
    sub_w = 0.02 * jax.random.normal(kw, (NUM_MODELS, D, NUM_CLASSES), dtype=jnp.float32)
    sub_b = 0.01 * jax.random.normal(kb, (NUM_MODELS, NUM_CLASSES), dtype=jnp.float32)
    # nn.Parameter(torch.ones(num_models) / num_models)
    weights = jnp.ones((NUM_MODELS,), jnp.float32) / NUM_MODELS
    set_weights = jnp.asarray(SET_WEIGHTS, jnp.float32)

    # Pure-JAX reference of the exact PyTorch forward (stack(dim=1).sum(dim=0)).
    x_flat = x.reshape(B, D)
    logits = jnp.einsum('bd,mdc->mbc', x_flat, sub_w) + sub_b[:, None, :]     # (M, B, NC)
    weighted = logits * (weights * set_weights)[:, None, None]                # (M, B, NC)
    ref = weighted.sum(axis=1)                                                # (M, NC): sum over batch

    # f32 weight path: tight tolerance (accumulation-order differences only).
    out = jax.block_until_ready(
        ensemble_forward(x, sub_w, sub_b, weights, set_weights))
    assert out.shape == (NUM_MODELS, NUM_CLASSES)
    assert jnp.allclose(out, ref, atol=1e-4, rtol=1e-4)

    # bf16 weight-slab path (halves the dominant weight DMA on v6e/v7x):
    # looser tolerance, quantization error only in the weights.
    out_bf16 = jax.block_until_ready(
        ensemble_forward(x, sub_w, sub_b, weights, set_weights,
                         weight_dtype=jnp.bfloat16))
    assert out_bf16.shape == (NUM_MODELS, NUM_CLASSES)
    assert jnp.allclose(out_bf16, ref, atol=3e-2, rtol=3e-2)

    print("KERNEL_OK")
</pallas_src>

<mosaic_0001>
module attributes {stable_mosaic.version = 11 : i64} {
  func.func @_ensemble_kernel(%arg0: memref<2x1024xf32, #tpu.memory_space<vmem>>, %arg1: memref<30x1024xf32, #tpu.memory_space<vmem>>, %arg2: memref<30x2xf32, #tpu.memory_space<vmem>>, %arg3: memref<30x1xf32, #tpu.memory_space<vmem>>) attributes {dimension_semantics = [], scalar_prefetch = 0 : i64, scratch_operands = 0 : i64, tpu.core_type = #tpu.core_type<tc>} {
    %c0 = arith.constant 0 : index
    %c0_0 = arith.constant 0 : index
    %0 = vector.load %arg0[%c0, %c0_0] : memref<2x1024xf32, #tpu.memory_space<vmem>>, vector<2x1024xf32>
    %cst = arith.constant dense<0.000000e+00> : vector<1024xf32>
    %1 = vector.multi_reduction <add>, %0, %cst [0] : vector<2x1024xf32> to vector<1024xf32>
    %2 = vector.shape_cast %1 : vector<1024xf32> to vector<1x1024xf32>
    %c0_1 = arith.constant 0 : index
    %c0_2 = arith.constant 0 : index
    %3 = vector.load %arg1[%c0_1, %c0_2] : memref<30x1024xf32, #tpu.memory_space<vmem>>, vector<30x1024xf32>
    %4 = vector.broadcast %2 : vector<1x1024xf32> to vector<30x1024xf32>
    %5 = arith.mulf %3, %4 : vector<30x1024xf32>
    %cst_3 = arith.constant dense<0.000000e+00> : vector<30xf32>
    %6 = vector.multi_reduction <add>, %5, %cst_3 [1] : vector<30x1024xf32> to vector<30xf32>
    %7 = vector.shape_cast %6 : vector<30xf32> to vector<30x1xf32>
    %c0_4 = arith.constant 0 : index
    %c0_5 = arith.constant 0 : index
    %8 = vector.load %arg2[%c0_4, %c0_5] : memref<30x2xf32, #tpu.memory_space<vmem>>, vector<30x1xf32>
    %9 = arith.mulf %7, %8 : vector<30x1xf32>
    %c0_6 = arith.constant 0 : index
    %c1 = arith.constant 1 : index
    %10 = vector.load %arg2[%c0_6, %c1] : memref<30x2xf32, #tpu.memory_space<vmem>>, vector<30x1xf32>
    %11 = arith.addf %9, %10 : vector<30x1xf32>
    %c0_7 = arith.constant 0 : index
    %c0_8 = arith.constant 0 : index
    %12 = vector.load %arg3[%c0_7, %c0_8] : memref<30x1xf32, #tpu.memory_space<vmem>>, vector<30x1xf32>
    tpu.vector_store %arg3[%c0_7, %c0_8], %11 {strides = array<i32>} : memref<30x1xf32, #tpu.memory_space<vmem>>, vector<30x1xf32>,
    return
  }
}

</mosaic_0001>

<bundles_post_ra>
// kernel: tpu_custom_call.1
= control target key start
LH: loop header
LB: loop body
LE: loop exit
PB: predicated region body
PF: predicated region fallthrough
CT: control target
= control target key end

     0   :  { %8 = vsyncpa [#allocation3], 0  ;;  %s310_s12 = smov [#allocation2]   ;;  %s447_s0 = inlined_call_operand.vmem [shape: f32[2,1024], index: 0, kind: input, shape index: {}]   ;;  %s448_s1 = inlined_call_operand.hbm [shape: f32[30,1024], index: 1, kind: input, shape index: {}]   ;;  %s449_s2 = inlined_call_operand.vmem [shape: f32[30,2], index: 2, kind: input, shape index: {}]   ;;  %s450_s3 = inlined_call_operand.vmem [shape: f32[30,1], index: 3, kind: output, shape index: {}]  }
   0x1   :  { %s16_s13 = sshll.u32 %s310_s12, 4  ;;  %s286_s16 = scalar_lea.hbm %s448_s1, 4096  ;;  %s17_s13 = int_to_ptr.vmem [resolvable:$true] %s16_s13 }
   0x2   :  { %p287_p0 = scmp.ne.s32.totalorder %s448_s1, %s286_s16  ;;  %p290_p1 = scmp.lt.u32.totalorder %s286_s16, %s448_s1 }
   0x4   :  { %p292_p2 = pnand %p290_p1, %p287_p0 }
   0x6   :  { %295 = shalt.err (!%p292_p2)
}
   0x7   :  { %s296_s21 = scalar_lea.vmem %s17_s13, 4096  ;;  %p301_p4 = scmp.lt.s32.totalorder %s17_s13, %s17_s13 }
   0x8   :  { %p297_p3 = scmp.ne.s32.totalorder %s17_s13, %s296_s21  ;;  %p302_p5 = scmp.lt.s32.totalorder %s296_s21, %s296_s21 }
   0xa   :  { %p303_p6 = por %p302_p5, %p301_p4 }
   0xc   :  { %p304_p7 = pnand %p303_p6, %p297_p3 }
   0xe   :  { %307 = shalt.err (!%p304_p7)
}
   0xf   :  { %s311_s22 = smov 1024   ;;  %s312_s23 = smov 64  }
  0x10   :  { %22 = dma.hbm_to_vmem [thread:$0]  %s448_s1, 4096, %s17_s13, [#allocation3], %s311_s22, %s311_s22, %s312_s23  }
  0x11   :  { %308 = dma.done.wait [#allocation3], 4096  }
  0x12   :  { %309 = vsyncadd [#allocation3], 4294963200  ;;  %v36_v0 = vlaneseq  ;;  %v313_v1 = vmov 1983009808   ;;  %v350_v6 = vld [vmem:[%s449_s2 + $0x8] sm:$0xff]  ;;  %v28_v7 = vld [vmem:[%s447_s0] sm:$0xff] }
  0x13   :  { %v34_v2 = vunpack.c.l.s4 %v313_v1  ;;  %vm74_vm0 = vcmask 1041408   ;;  %s314_s30 = smov 127   ;;  %v29_v8 = vld [vmem:[%s447_s0 + $0x8] sm:$0xff]  ;;  %v32_v9 = vcombine.high %v28_v7, %v28_v7  ;;  %v363_v11 = vld [vmem:[%s449_s2 + $0x10] sm:$0xff]  ;;  %v131_v57 = vld [vmem:[#allocation2] sm:$0xff]  ;;  %vm222_vm1 = vcmask 1045504  }
  0x14   :  { %v37_v3 = vshrl.u32 %v36_v0, 7  ;;  %254 = vrot.lane.b32.xlu1 %v350_v6, %s314_s30  ;;  %v49_v12 = vcombine.high %v29_v8, %v29_v8  ;;  %v132_v1 = vld [vmem:[#allocation2 + $0x8] sm:$0xff]  ;;  %vm268_vm2 = vcmask 7168   ;;  %vm272_vm3 = vcmask 5120  }
  0x15   :  { %v35_v4 = vunpack.c.0.s8 %v34_v2  ;;  %v133_v2 = vld [vmem:[#allocation2 + $0x10] sm:$0xff] }
  0x17   :  { %v38_v5 = vsub.s32 %v35_v4, %v37_v3  ;;  %v139_v3 = vld [vmem:[#allocation2 + $0x40] sm:$0xff] }
  0x18   :  { %256 = vrot.lane.b32.xlu1 %v363_v11, %s314_s30 }
  0x19   :  { %v39_v10 = vrot.slane %v28_v7, %v38_v5  ;;  %v56_v13 = vrot.slane %v29_v8, %v38_v5  ;;  %v46_v14 = vrot.slane %v32_v9, %v38_v5  ;;  %v63_v17 = vrot.slane %v49_v12, %v38_v5  ;;  %v140_v9 = vld [vmem:[#allocation2 + $0x48] sm:$0xff] }
  0x1b   :  { %v47_v15 = vcombine.high %v39_v10, %v39_v10  ;;  %v75_v16 = vsel %vm74_vm0, %v39_v10, 0.0  ;;  %v64_v18 = vcombine.high %v56_v13, %v56_v13  ;;  %v103_v20 = vsel %vm74_vm0, %v56_v13, 0.0 }
  0x1c   :  { %v76_v19 = vrot.slane %v75_v16, 4  ;;  %v48_v21 = vcombine.high %v46_v14, %v46_v14  ;;  %v89_v23 = vsel %vm74_vm0, %v46_v14, 0.0  ;;  %v104_v24 = vrot.slane %v103_v20, 4 }
  0x1d   :  { %v82_v22 = vsel %vm74_vm0, %v47_v15, 0.0  ;;  %v65_v25 = vcombine.high %v63_v17, %v63_v17  ;;  %v90_v28 = vrot.slane %v89_v23, 4  ;;  %v110_v31 = vsel %vm74_vm0, %v64_v18, 0.0  ;;  %v134_v15 = vld [vmem:[#allocation2 + $0x18] sm:$0xff] }
  0x1e   :  { %v77_v26 = vadd.f32 %v76_v19, %v75_v16  ;;  %v83_v27 = vrot.slane %v82_v22, 4  ;;  %v96_v29 = vsel %vm74_vm0, %v48_v21, 0.0  ;;  %v105_v30 = vadd.f32 %v104_v24, %v103_v20  ;;  %v141_v16 = vld [vmem:[#allocation2 + $0x50] sm:$0xff]  ;;  %v135_v24 = vld [vmem:[#allocation2 + $0x20] sm:$0xff] }
  0x1f   :  { %v117_v32 = vsel %vm74_vm0, %v63_v17, 0.0  ;;  %v91_v35 = vadd.f32 %v90_v28, %v89_v23  ;;  %v97_v36 = vrot.slane %v96_v29, 4  ;;  %v111_v38 = vrot.slane %v110_v31, 4  ;;  %v137_v28 = vld [vmem:[#allocation2 + $0x30] sm:$0xff] }
  0x20   :  { %v78_v33 = vrot.slane %v77_v26, 2  ;;  %v84_v34 = vadd.f32 %v83_v27, %v82_v22  ;;  %v106_v37 = vrot.slane %v105_v30, 2  ;;  %v118_v39 = vrot.slane %v117_v32, 4 }
  0x21   :  { %v124_v40 = vsel %vm74_vm0, %v65_v25, 0.0  ;;  %v92_v43 = vrot.slane %v91_v35, 2  ;;  %v98_v44 = vadd.f32 %v97_v36, %v96_v29  ;;  %v112_v46 = vadd.f32 %v111_v38, %v110_v31  ;;  %v136_v25 = vld [vmem:[#allocation2 + $0x28] sm:$0xff]  ;;  %v143_v36 = vld [vmem:[#allocation2 + $0x60] sm:$0xff] }
  0x22   :  { %v79_v41 = vadd.f32 %v78_v33, %v77_v26  ;;  %v85_v42 = vrot.slane %v84_v34, 2  ;;  %v107_v45 = vadd.f32 %v106_v37, %v105_v30  ;;  %v119_v47 = vadd.f32 %v118_v39, %v117_v32  ;;  %v142_v26 = vld [vmem:[#allocation2 + $0x58] sm:$0xff]  ;;  %v147_v32 = vld [vmem:[#allocation2 + $0x80] sm:$0xff]  ;;  %v148_v33 = vld [vmem:[#allocation2 + $0x88] sm:$0xff] }
  0x23   :  { %v125_v48 = vrot.slane %v124_v40, 4  ;;  %v93_v51 = vadd.f32 %v92_v43, %v91_v35  ;;  %v99_v52 = vrot.slane %v98_v44, 2  ;;  %v113_v54 = vrot.slane %v112_v46, 2  ;;  %v138_v35 = vld [vmem:[#allocation2 + $0x38] sm:$0xff]  ;;  %v149_v37 = vld [vmem:[#allocation2 + $0x90] sm:$0xff] }
  0x24   :  { %v80_v49 = vrot.slane %v79_v41, 1  ;;  %v86_v50 = vadd.f32 %v85_v42, %v84_v34  ;;  %v108_v53 = vrot.slane %v107_v45, 1  ;;  %v120_v55 = vrot.slane %v119_v47, 2 }
  0x25   :  { %v126_v56 = vadd.f32 %v125_v48, %v124_v40  ;;  %v94_v60 = vrot.slane %v93_v51, 1  ;;  %v100_v61 = vadd.f32 %v99_v52, %v98_v44  ;;  %v114_v62 = vadd.f32 %v113_v54, %v112_v46  ;;  %v144_v40 = vld [vmem:[#allocation2 + $0x68] sm:$0xff]  ;;  %v150_v44 = vld [vmem:[#allocation2 + $0x98] sm:$0xff] }
  0x26   :  { %v375_v58 = vadd.f32 %v80_v49, %v79_v41  ;;  %v87_v59 = vrot.slane %v86_v50, 1  ;;  %v121_v63 = vadd.f32 %v120_v55, %v119_v47  ;;  %v382_v10 = vadd.f32 %v108_v53, %v107_v45  ;;  %v145_v41 = vld [vmem:[#allocation2 + $0x70] sm:$0xff]  ;;  %v146_v47 = vld [vmem:[#allocation2 + $0x78] sm:$0xff]  ;;  %v156_v55 = vld [vmem:[#allocation2 + $0xc8] sm:$0x3f] }
  0x27   :  { %v127_v0 = vrot.slane %v126_v56, 2  ;;  %v379_v5 = vadd.f32 %v94_v60, %v93_v51  ;;  %v101_v7 = vrot.slane %v100_v61, 1  ;;  %v115_v12 = vrot.slane %v114_v62, 1 }
  0x28   :  { %v377_v4 = vadd.f32 %v87_v59, %v86_v50  ;;  %v163_v8 = vmul.f32 %v131_v57, %v375_v58  ;;  %v122_v13 = vrot.slane %v121_v63, 1  ;;  %v171_v20 = vmul.f32 %v139_v3, %v375_v58  ;;  %v155_v50 = vld [vmem:[#allocation2 + $0xc0] sm:$0x3f]  ;;  %v158_v57 = vld [vmem:[#allocation2 + $0xd8] sm:$0x3f] }
  0x29   :  { %v128_v14 = vadd.f32 %v127_v0, %v126_v56  ;;  %v102_v17 = vadd.f32 %v101_v7, %v100_v61  ;;  %v165_v19 = vmul.f32 %v133_v2, %v379_v5  ;;  %v387_v21 = vadd.f32 %v115_v12, %v114_v62  ;;  %v157_v56 = vld [vmem:[#allocation2 + $0xd0] sm:$0x3f]  ;;  %v151_v62 = vld [vmem:[#allocation2 + $0xa0] sm:$0xff]  ;;  %v152_v2 = vld [vmem:[#allocation2 + $0xa8] sm:$0xff] }
  0x2a   :  { %v164_v18 = vmul.f32 %v132_v1, %v377_v4  ;;  %v389_v22 = vadd.f32 %v122_v13, %v121_v63  ;;  %v172_v27 = vmul.f32 %v140_v9, %v377_v4  ;;  %v173_v31 = vmul.f32 %v141_v16, %v379_v5  ;;  %v159_v7 = vld [vmem:[#allocation2 + $0xe0] sm:$0x3f] }
  0x2b   :  { %v129_v23 = vrot.slane %v128_v14, 1  ;;  %v166_v29 = vmul.f32 %v134_v15, %v102_v17  ;;  %v167_v38 = vmul.f32 %v135_v24, %v382_v10  ;;  %v174_v42 = vmul.f32 %v142_v26, %v102_v17 }
  0x2c   :  { %v195_v30 = vadd.f32 %v164_v18, %v163_v8  ;;  %v204_v43 = vadd.f32 %v172_v27, %v171_v20  ;;  %v168_v45 = vmul.f32 %v136_v25, %v387_v21  ;;  %v169_v46 = vmul.f32 %v137_v28, %v389_v22  ;;  %v153_v18 = vld [vmem:[#allocation2 + $0xb0] sm:$0xff] }
  0x2d   :  { %v393_v34 = vadd.f32 %v129_v23, %v128_v14  ;;  %v179_v48 = vmul.f32 %v147_v32, %v375_v58  ;;  %v180_v49 = vmul.f32 %v148_v33, %v377_v4  ;;  %v175_v52 = vmul.f32 %v143_v36, %v382_v10  ;;  %v160_v23 = vld [vmem:[#allocation2 + $0xe8] sm:$0x3f] }
  0x2e   :  { %v196_v39 = vadd.f32 %v195_v30, %v165_v19  ;;  %v205_v53 = vadd.f32 %v204_v43, %v173_v31  ;;  %v181_v54 = vmul.f32 %v149_v37, %v379_v5  ;;  %v176_v60 = vmul.f32 %v144_v40, %v387_v21  ;;  %v162_v37 = vld [vmem:[#allocation2 + $0xf8] sm:$0x3f] }
  0x2f   :  { %v170_v59 = vmul.f32 %v138_v35, %v393_v34  ;;  %v177_v61 = vmul.f32 %v145_v41, %v389_v22  ;;  %v182_v63 = vmul.f32 %v150_v44, %v102_v17  ;;  %v213_v3 = vadd.f32 %v180_v49, %v179_v48 }
  0x30   :  { %v197_v51 = vadd.f32 %v196_v39, %v166_v29  ;;  %v206_v1 = vadd.f32 %v205_v53, %v174_v42  ;;  %v187_v8 = vmul.f32 %v155_v50, %v375_v58  ;;  %v178_v9 = vmul.f32 %v146_v47, %v393_v34  ;;  %v154_v29 = vld [vmem:[#allocation2 + $0xb8] sm:$0xff]  ;;  %v240_v53 = vld [vmem:[%s449_s2] sm:$0xff] }
  0x31   :  { %v188_v12 = vmul.f32 %v156_v55, %v377_v4  ;;  %v189_v13 = vmul.f32 %v157_v56, %v379_v5  ;;  %v190_v14 = vmul.f32 %v158_v57, %v102_v17  ;;  %v183_v19 = vmul.f32 %v151_v62, %v382_v10  ;;  %v161_v5 = vld [vmem:[#allocation2 + $0xf0] sm:$0x3f] }
  0x32   :  { %v198_v0 = vadd.f32 %v197_v51, %v167_v38  ;;  %v207_v16 = vadd.f32 %v206_v1, %v175_v52  ;;  %v214_v20 = vadd.f32 %v213_v3, %v181_v54  ;;  %v184_v24 = vmul.f32 %v152_v2, %v387_v21 }
  0x33   :  { %v191_v25 = vmul.f32 %v159_v7, %v382_v10  ;;  %v223_v58 = vsel %vm222_vm1, %v187_v8, 0.0  ;;  %v224_v26 = vsel %vm222_vm1, %v188_v12, 0.0  ;;  %v185_v30 = vmul.f32 %v153_v18, %v389_v22 }
  0x34   :  { %v199_v15 = vadd.f32 %v198_v0, %v168_v45  ;;  %v208_v4 = vadd.f32 %v207_v16, %v176_v60  ;;  %v215_v28 = vadd.f32 %v214_v20, %v182_v63  ;;  %v225_v17 = vadd.f32 %v224_v26, %v223_v58 }
  0x35   :  { %v192_v31 = vmul.f32 %v160_v23, %v387_v21  ;;  %v226_v32 = vsel %vm222_vm1, %v189_v13, 0.0  ;;  %v228_v33 = vsel %vm222_vm1, %v190_v14, 0.0  ;;  %v193_v39 = vmul.f32 %v161_v5, %v389_v22 }
  0x36   :  { %v200_v27 = vadd.f32 %v199_v15, %v169_v46  ;;  %v209_v10 = vadd.f32 %v208_v4, %v177_v61  ;;  %v216_v36 = vadd.f32 %v215_v28, %v183_v19  ;;  %v227_v38 = vadd.f32 %v226_v32, %v225_v17 }
  0x37   :  { %v230_v40 = vsel %vm222_vm1, %v191_v25, 0.0  ;;  %v186_v42 = vmul.f32 %v154_v29, %v393_v34  ;;  %v194_v21 = vmul.f32 %v162_v37, %v393_v34  ;;  %v232_v45 = vsel %vm222_vm1, %v192_v31, 0.0  ;;  %v243_v34 = vld [vmem:[%s449_s2 + $0x18] sm:$0x3f] }
  0x38   :  { %v201_v35 = vadd.f32 %v200_v27, %v170_v59  ;;  %v210_v41 = vadd.f32 %v209_v10, %v178_v9  ;;  %v217_v43 = vadd.f32 %v216_v36, %v184_v24  ;;  %v229_v44 = vadd.f32 %v228_v33, %v227_v38 }
  0x39   :  { %v234_v48 = vsel %vm222_vm1, %v193_v39, 0.0  ;;  %v236_v22 = vsel %vm222_vm1, %v194_v21, 0.0 }
  0x3a   :  { %202 = vadd.xlane.f32.xlu0 %v201_v35  ;;  %v218_v46 = vadd.f32 %v217_v43, %v185_v30  ;;  %v231_v47 = vadd.f32 %v230_v40, %v229_v44 }
  0x3c   :  { %v219_v49 = vadd.f32 %v218_v46, %v186_v42  ;;  %v233_v50 = vadd.f32 %v232_v45, %v231_v47 }
  0x3e   :  { %211 = vadd.xlane.f32.xlu0 %v210_v41  ;;  %v235_v51 = vadd.f32 %v234_v48, %v233_v50  ;;  %220 = vadd.xlane.f32.xlu1 %v219_v49 }
  0x40   :  { %v237_v52 = vadd.f32 %v236_v22, %v235_v51 }
  0x42   :  { %238 = vadd.xlane.f32.xlu1 %v237_v52 }
  0x53   :  { %258 = vrot.lane.b32.xlu1 %v243_v34, %s314_s30 }
  0x54   :  { %252 = vrot.lane.b32.xlu0 %v240_v53, %s314_s30 }
  0x86   :  { %v255_v54 = vpop.permute.xlu1 %254 }
  0x8a   :  { %v257_v56 = vpop.permute.xlu1 %256 }
  0xc7   :  { %v203_v55 = vpop.xlane.xlu0 %202 }
  0xc8   :  { %v244_v59 = vmul.f32 %v240_v53, %v203_v55 }
  0xcb   :  { %v212_v57 = vpop.xlane.xlu0 %211  ;;  %v221_v62 = vpop.xlane.xlu1 %220 }
  0xcc   :  { %v245_v60 = vmul.f32 %v350_v6, %v212_v57  ;;  %v246_v63 = vmul.f32 %v363_v11, %v221_v62 }
  0xce   :  { %v265_v61 = vadd.f32 %v255_v54, %v245_v60  ;;  %v266_v2 = vadd.f32 %v257_v56, %v246_v63 }
  0xcf   :  { %v253_v0 = vpop.permute.xlu0 %252  ;;  %v239_v3 = vpop.xlane.xlu1 %238 }
  0xd0   :  { %270 = vst.msk [vmem:[%s450_s3 + $0x8] sm:$0xff] %vm268_vm2, %v265_v61  ;;  %v264_v1 = vadd.f32 %v253_v0, %v244_v59  ;;  %271 = vst.msk [vmem:[%s450_s3 + $0x10] sm:$0xff] %vm268_vm2, %v266_v2  ;;  %v247_v6 = vmul.f32 %v243_v34, %v239_v3 }
  0xd2   :  { %269 = vst.msk [vmem:[%s450_s3] sm:$0xff] %vm268_vm2, %v264_v1 }
  0xd3   :  { %v259_v7 = vpop.permute.xlu1 %258 }
  0xd4   :  { %v267_v11 = vadd.f32 %v259_v7, %v247_v6 }
  0xd6   :  { %273 = vst.msk [vmem:[%s450_s3 + $0x18] sm:$0x3f] %vm272_vm3, %v267_v11 }
  0xd7   :  { %278 = vsyncpa [#allocation3], 1 }

</bundles_post_ra>
